<compile_context>
chip_gen: v6e
topology: v6e:2x2x1
jax: 0.10.0
libtpu: 0.0.40
codegen_flags: <defaults>
</compile_context>

<pallas_src>
import jax
import jax.numpy as jnp
from jax import lax
from jax.experimental import pallas as pl
from jax.experimental.pallas import tpu as pltpu

B, C, H, W = 2, 128, 16, 16
HW = H * W


def cam_kernel(gamma_ref, x_ref, out_ref):
    x = x_ref[0]                                              # [C, HW] f32

    # energy[i, j] = <x_i, x_j>  -- f32 MXU matmul (precision-sensitive).
    energy = jnp.dot(x, x.T, preferred_element_type=jnp.float32)      # [C, C]

    # energy_new = rowmax(energy) - energy ; attention = softmax(energy_new)
    energy_new = jnp.max(energy, axis=-1, keepdims=True) - energy
    e_max = jnp.max(energy_new, axis=-1, keepdims=True)
    p = jnp.exp(energy_new - e_max)
    att = p / jnp.sum(p, axis=-1, keepdims=True)                      # [C, C]

    # out = attention @ X -- bf16 operands on the MXU, f32 accumulation.
    ctx = jnp.dot(att.astype(jnp.bfloat16), x.astype(jnp.bfloat16),
                  preferred_element_type=jnp.float32)                 # [C, HW]

    gamma = gamma_ref[0]                                              # scalar
    out_ref[0] = (gamma * ctx + x).astype(out_ref.dtype)


def cam_module(x_nchw, gamma):
    b, c, h, w = x_nchw.shape
    hw = h * w
    x = x_nchw.reshape(b, c, hw).astype(jnp.float32)
    gamma_arr = jnp.asarray(gamma, jnp.float32).reshape(1)

    out = pl.pallas_call(
        cam_kernel,
        out_shape=jax.ShapeDtypeStruct((b, c, hw), jnp.float32),
        grid_spec=pltpu.PrefetchScalarGridSpec(
            num_scalar_prefetch=0,
            grid=(b,),
            in_specs=[
                pl.BlockSpec(memory_space=pltpu.MemorySpace.SMEM),     # gamma
                pl.BlockSpec((1, c, hw), lambda i: (i, 0, 0)),         # x
            ],
            out_specs=pl.BlockSpec((1, c, hw), lambda i: (i, 0, 0)),
        ),
        compiler_params=pltpu.CompilerParams(
            dimension_semantics=("parallel",)),
    )(gamma_arr, x)
    return out.reshape(b, c, h, w)


def reference(x_nchw, gamma):
    b, c, h, w = x_nchw.shape
    xf = x_nchw.reshape(b, c, h * w)
    energy = jnp.einsum("bcs,bds->bcd", xf, xf,
                        precision=lax.Precision.HIGHEST)
    energy_new = jnp.max(energy, axis=-1, keepdims=True) - energy
    att = jax.nn.softmax(energy_new, axis=-1)
    out = jnp.einsum("bcd,bds->bcs", att, xf,
                     precision=lax.Precision.HIGHEST).reshape(b, c, h, w)
    return gamma * out + x_nchw


if __name__ == "__main__":
    key = jax.random.PRNGKey(0)
    kx, _ = jax.random.split(key)
    x = jax.random.normal(kx, (B, C, H, W), jnp.float32)
    # nn.Parameter(torch.zeros(1)) would make the module an identity; use a
    # nonzero learned-looking value so the attention path is exercised.
    gamma = jnp.float32(0.5)

    out = jax.block_until_ready(cam_module(x, gamma))
    ref = jax.block_until_ready(reference(x, gamma))

    assert out.shape == x.shape, out.shape
    assert jnp.allclose(out, ref, rtol=2e-2, atol=2e-2), \
        float(jnp.max(jnp.abs(out - ref)))
    print("KERNEL_OK")
</pallas_src>

<mosaic_0001>
module attributes {stable_mosaic.version = 11 : i64} {
  func.func @cam_kernel(%arg0: i32, %arg1: memref<1xf32, #tpu.memory_space<smem>>, %arg2: memref<1x128x256xf32, #tpu.memory_space<vmem>>, %arg3: memref<1x128x256xf32, #tpu.memory_space<vmem>>) attributes {dimension_semantics = [#tpu.dimension_semantics<parallel>], iteration_bounds = array<i64: 2>, scalar_prefetch = 0 : i64, scratch_operands = 0 : i64, tpu.core_type = #tpu.core_type<tc>, window_params = [{transform_indices = @transform_0, window_bounds = array<i64: 1>}, {transform_indices = @transform_1, window_bounds = array<i64: 1, 128, 256>}, {transform_indices = @transform_2, window_bounds = array<i64: 1, 128, 256>}]} {
    %c0 = arith.constant 0 : index
    %c0_0 = arith.constant 0 : index
    %c0_1 = arith.constant 0 : index
    %0 = vector.load %arg2[%c0, %c0_0, %c0_1] : memref<1x128x256xf32, #tpu.memory_space<vmem>>, vector<1x128x256xf32>
    %1 = vector.shape_cast %0 : vector<1x128x256xf32> to vector<128x256xf32>
    %2 = tpu.transpose %1, [1, 0] : vector<128x256xf32> -> vector<256x128xf32>
    %cst = arith.constant dense<0.000000e+00> : vector<128x128xf32>
    %3 = tpu.matmul %1, %2, %cst {dimension_numbers = #tpu.dot_dimension_numbers<[1], [0], [0], [1], [0, 0, 1, 1], [], []>} : vector<128x256xf32>, vector<256x128xf32>, vector<128x128xf32> -> vector<128x128xf32>
    %cst_2 = arith.constant dense<0xFF800000> : vector<128xf32>
    %4 = vector.multi_reduction <maximumf>, %3, %cst_2 [1] : vector<128x128xf32> to vector<128xf32>
    %5 = vector.shape_cast %4 : vector<128xf32> to vector<128x1xf32>
    %6 = vector.broadcast %5 : vector<128x1xf32> to vector<128x128xf32>
    %7 = arith.subf %6, %3 : vector<128x128xf32>
    %cst_3 = arith.constant dense<0xFF800000> : vector<128xf32>
    %8 = vector.multi_reduction <maximumf>, %7, %cst_3 [1] : vector<128x128xf32> to vector<128xf32>
    %9 = vector.shape_cast %8 : vector<128xf32> to vector<128x1xf32>
    %10 = vector.broadcast %9 : vector<128x1xf32> to vector<128x128xf32>
    %11 = arith.subf %7, %10 : vector<128x128xf32>
    %12 = math.exp %11 : vector<128x128xf32>
    %cst_4 = arith.constant dense<0.000000e+00> : vector<128xf32>
    %13 = vector.multi_reduction <add>, %12, %cst_4 [1] : vector<128x128xf32> to vector<128xf32>
    %14 = vector.shape_cast %13 : vector<128xf32> to vector<128x1xf32>
    %15 = vector.broadcast %14 : vector<128x1xf32> to vector<128x128xf32>
    %16 = arith.divf %12, %15 : vector<128x128xf32>
    %17 = arith.truncf %16 : vector<128x128xf32> to vector<128x128xbf16>
    %18 = arith.truncf %1 : vector<128x256xf32> to vector<128x256xbf16>
    %cst_5 = arith.constant dense<0.000000e+00> : vector<128x256xf32>
    %19 = tpu.matmul %17, %18, %cst_5 {dimension_numbers = #tpu.dot_dimension_numbers<[1], [0], [0], [1], [0, 0, 1, 1], [], []>} : vector<128x128xbf16>, vector<128x256xbf16>, vector<128x256xf32> -> vector<128x256xf32>
    %c0_6 = arith.constant 0 : index
    %20 = memref.load %arg1[%c0_6] : memref<1xf32, #tpu.memory_space<smem>>
    %21 = vector.broadcast %20 : f32 to vector<128x256xf32>
    %22 = arith.mulf %21, %19 : vector<128x256xf32>
    %23 = arith.addf %22, %1 : vector<128x256xf32>
    %c0_7 = arith.constant 0 : index
    %c0_8 = arith.constant 0 : index
    %c0_9 = arith.constant 0 : index
    %24 = vector.load %arg3[%c0_7, %c0_8, %c0_9] : memref<1x128x256xf32, #tpu.memory_space<vmem>>, vector<1x128x256xf32>
    %25 = vector.shape_cast %24 : vector<1x128x256xf32> to vector<128x256xf32>
    %26 = vector.shape_cast %23 : vector<128x256xf32> to vector<1x128x256xf32>
    tpu.vector_store %arg3[%c0_7, %c0_8, %c0_9], %26 {strides = array<i32>} : memref<1x128x256xf32, #tpu.memory_space<vmem>>, vector<1x128x256xf32>,
    return
  }
  func.func @transform_0(%arg0: i32) -> i32 {
    %c0_i32 = arith.constant 0 : i32
    %c0_i32_0 = arith.constant 0 : i32
    return %c0_i32 : i32
  }
  func.func @transform_1(%arg0: i32) -> (i32, i32, i32) {
    %c0_i32 = arith.constant 0 : i32
    %c0_i32_0 = arith.constant 0 : i32
    %c0_i32_1 = arith.constant 0 : i32
    return %arg0, %c0_i32, %c0_i32_0 : i32, i32, i32
  }
  func.func @transform_2(%arg0: i32) -> (i32, i32, i32) {
    %c0_i32 = arith.constant 0 : i32
    %c0_i32_0 = arith.constant 0 : i32
    %c0_i32_1 = arith.constant 0 : i32
    return %arg0, %c0_i32, %c0_i32_0 : i32, i32, i32
  }
}

</mosaic_0001>

<bundles_post_ra>
// kernel: tpu_custom_call.1
= control target key start
LH: loop header
LB: loop body
LE: loop exit
PB: predicated region body
PF: predicated region fallthrough
CT: control target
= control target key end

     0   :  { %s1691_s0 = inlined_call_operand.<no memory space> [shape: f32[1], index: 0, kind: input, shape index: {}]   ;;  %s1692_s1 = inlined_call_operand.hbm [shape: f32[2,128,256], index: 1, kind: input, shape index: {}]   ;;  %s1693_s2 = inlined_call_operand.hbm [shape: f32[2,128,256], index: 2, kind: output, shape index: {}]  }
   0x1   :  { %7 = sst [smem:[#allocation2]] %s1691_s0 }
   0x2   :  { %8 = vsyncpa [#allocation4], 0 }
   0x3   :  { %10 = vsyncpa [#allocation4 + $0x1], 0 }
   0x4   :  { %11 = vsyncpa [#allocation5], 0 }
   0x5   :  { %13 = vsyncpa [#allocation5 + $0x1], 0  ;;  %s1110_s11 = smov 0   ;;  %s1112_s12 = smov 0  }
   0x6   :  { %s1114_s13 = smov 0   ;;  %s1116_s14 = smov 0  }
   0x7 LB: > { %s1131_s0 = sadd.s32 4294967295, %s1083_s14   ;;  %s855_s15 = sadd.s32 4294967294, %s1083_s14   ;;  %s1083_s14 = sphi %s1116_s14, %s1708_s14   ;;  %s1079_s13 = sphi %s1114_s13, %s1707_s13   ;;  %s1075_s12 = sphi %s1112_s12, %s1706_s12   ;;  %s1071_s11 = sphi %s1110_s11, %s1705_s11  }
   0x8   : > { %s1135_s16 = sadd.s32 1, %s1083_s14   ;;  %s47_s17 = sadd.s32 1, %s1079_s13 }
   0x9   : > { %s44_s18 = ssub.s32 %s1083_s14, %s1135_s16  ;;  %p54_p0 = scmp.ne.s32.totalorder %s1079_s13, %s1075_s12 }
   0xa   : > { %p45_p1 = scmp.eq.s32.totalorder %s44_s18, 0  ;;  %p55_p2 = scmp.eq.s32.totalorder %s1083_s14, 0 }
   0xb   : > { %p60_p3 = scmp.ne.s32.totalorder %s1075_s12, %s1071_s11  ;;  %p61_p4 = scmp.eq.s32.totalorder %s1131_s0, 0 }
   0xc   : > { %s1147_s19 = scalar_select %p45_p1, %s1079_s13, %s47_s17  }
   0xd   : > { %p1149_p5 = por %p55_p2, %p54_p0  ;;  %p1153_p6 = por %p61_p4, %p60_p3 }
   0xe   : > { %p84_p7 = scmp.eq.s32.totalorder %s1131_s0, 1  ;;  %p90_p8 = scmp.eq.s32.totalorder %s855_s15, 1 }
   0xf   : > { %s1697_s21 = scalar_select %p1153_p6, 1, 0 }
  0x10   : > { %p883_p10 = scmp.lt.s32.totalorder %s1083_s14, 2  ;;  %p1160_p11 = por %p84_p7, %p54_p0 }
  0x11   : > { %p1164_p12 = por %p90_p8, %p60_p3  ;;  %s113_s24 = sand.u32 1, %s1079_s13  }
  0x12   : > { %s1698_s22 = scalar_select %p1160_p11, 1, 0 }
  0x13   : > { %s1699_s23 = scalar_select %p1164_p12, 1, 0 }
  0x14   : > { %s869_s25 = sshll.u32 %s1083_s14, 12  ;;  %s858_s26 = sshll.u32 %s113_s24, 8 }
  0x15   : > { %s1173_s29 = scalar_lea.hbm %s1692_s1, %s869_s25  ;;  %s117_s30 = scalar_lea.vmem [#allocation3], %s858_s26 }
  0x16   : > { %s124_s3 = sshll.u32 %s117_s30, 4  ;;  %p1177_p13 = pnand %p883_p10, %p1149_p5  ;;  %s1181_s3 = int_to_ptr.vmem [resolvable:$true] %s124_s3 }
  0x17   : > { %s1183_s5 = scalar_lea.sflag [#allocation4], %s113_s24  ;;  %s991_s6 = scalar_lea.hbm %s1173_s29, 4096 }
  0x18   : > { %p992_p0 = scmp.ne.s32.totalorder %s1173_s29, %s991_s6  ;;  %p993_p1 = pneg %p1177_p13 }
  0x19   : > { %s996_s9 = scalar_lea.hbm %s1692_s1, 8192  ;;  %p997_p4 = scmp.lt.s32.totalorder %s1173_s29, %s1692_s1 }
  0x1a   : > { %p994_p2 = pnand %p993_p1, %p992_p0  ;;  %p998_p5 = scmp.lt.s32.totalorder %s996_s9, %s991_s6 }
  0x1c   : > { %p995_p3 = pneg %p994_p2  ;;  %p999_p7 = por %p998_p5, %p997_p4 }
  0x1e   : > { %p1000_p8 = pnand %p999_p7, %p995_p3 }
  0x20   : > { %1003 = shalt.err (!%p1000_p8)
}
  0x21   : > { %s1004_s17 = scalar_lea.vmem %s1181_s3, 4096  ;;  %s1085_s18 = smov [#allocation3]  }
  0x22   : > { %p1005_p10 = scmp.ne.s32.totalorder %s1181_s3, %s1004_s17  ;;  %s1009_s20 = sshll.u32 %s1085_s18, 4  ;;  %s1010_s20 = int_to_ptr.vmem [resolvable:$false] %s1009_s20 }
  0x23   : > { %s1011_s24 = scalar_lea.vmem %s1010_s20, 8192  ;;  %p1012_p2 = scmp.lt.s32.totalorder %s1181_s3, %s1010_s20 }
  0x24   : > { %p1007_p9 = pnand %p1005_p10, %p993_p1  ;;  %p1013_p12 = scmp.lt.s32.totalorder %s1011_s24, %s1004_s17 }
  0x26   : > { %p1008_p0 = pneg %p1007_p9  ;;  %p1014_p11 = por %p1013_p12, %p1012_p2 }
  0x28   : > { %p1015_p6 = pnand %p1014_p11, %p1008_p0 }
  0x2a   : > { %1018 = shalt.err (!%p1015_p6)
}
  0x2b   : > { %s1086_s25 = smov 256   ;;  %s1087_s26 = smov 16  }
  0x2c   : > { %878 = dma.hbm_to_vmem [thread:$0]  (!%p1177_p13), %s1173_s29, 4096, %s1181_s3, %s1183_s5, %s1086_s25, %s1086_s25, %s1087_s26  }
  0x2d   : > { %p861_p9 = scmp.ge.s32.totalorder %s1083_s14, 1  ;;  %p132_p1 = scmp.lt.s32.totalorder %s1083_s14, 3 }
  0x2f   : > { %p133_p3 = pnand %p861_p9, %p132_p1 }
  0x30   : > { %s1207_s27 = sand.u32 (!%p133_p3), 1, %s1075_s12   ;;  %p1701_p6 = scmp.ne.s32.totalorder (!%p133_p3), %s1697_s21, 0 }
  0x31   : > { %136 = sbr.rel (%p133_p3) target bundleno = 1042 (0x412), region = 28  ;;  %s862_s28 = sshll.u32 (!%p133_p3), %s1207_s27, 8 }
  0x32   : > { %s139_s30 = scalar_lea.sflag (!%p133_p3), [#allocation4], %s1207_s27  ;;  %s1213_s6 = scalar_lea.vmem (!%p133_p3), [#allocation3], %s862_s28 }
  0x36   : > { %1062 = dma.done.wait (%p1701_p6), %s139_s30, 4096  }
  0x37   : > { %1064 = vsyncadd (%p1701_p6), %s139_s30, 4294963200  ;;  %v1220_v0 = vld [vmem:[%s1213_s6 + $0xf8] sm:$0xff]  ;;  %v1223_v1 = vld [vmem:[%s1213_s6 + $0xf0] sm:$0xff]  ;;  %s670_s21 = sld [smem:[#allocation2]]  ;;  %s1546_s29 = scalar_lea.vmem [#allocation6], %s862_s28 }
  0x38   : > { %v1226_v2 = vld [vmem:[%s1213_s6 + $0xe8] sm:$0xff]  ;;  %196 = vmatprep.subr.mxu0 %v1220_v0  ;;  %v1232_v3 = vld [vmem:[%s1213_s6 + $0xe0] sm:$0xff]  ;;  %v1235_v4 = vld [vmem:[%s1213_s6 + $0xd8] sm:$0xff]  ;;  %s870_s3 = sshll.u32 %s1131_s0, 12  ;;  %s782_s4 = sshll.u32 %s1546_s29, 4  ;;  %s1645_s4 = int_to_ptr.vmem [resolvable:$true] %s782_s4 }
  0x39   : > { %197 = vmatpush1.xpose.msra.mxu0 %v1223_v1  ;;  %v1240_v5 = vld [vmem:[%s1213_s6 + $0xd0] sm:$0xff]  ;;  %v1243_v6 = vld [vmem:[%s1213_s6 + $0xc8] sm:$0xff]  ;;  %v1251_v8 = vld [vmem:[%s1213_s6 + $0xc0] sm:$0xff]  ;;  %s1643_s8 = scalar_lea.hbm %s1693_s2, %s870_s3  ;;  %s769_s0 = scalar_lea.sflag [#allocation5], %s1207_s27 }
  0x3a   : > { %198 = vmatprep.subr.mxu0 %v1226_v2  ;;  %v1247_v7 = vld [vmem:[%s1213_s6 + $0x8] sm:$0xff]  ;;  %v1255_v9 = vld [vmem:[%s1213_s6 + $0xb8] sm:$0xff]  ;;  %v1260_v10 = vld [vmem:[%s1213_s6 + $0xb0] sm:$0xff]  ;;  %s1019_s9 = scalar_lea.vmem %s1645_s4, 4096  ;;  %p1702_p12 = scmp.ne.s32.totalorder %s1698_s22, 0 }
  0x3b   : > { %260 = vmatprep.mubr.f32.mxu0 %v1247_v7  ;;  %v1263_v11 = vld [vmem:[%s1213_s6 + $0xa8] sm:$0xff]  ;;  %v1268_v12 = vld [vmem:[%s1213_s6 + $0xa0] sm:$0xff]  ;;  %v1271_v13 = vld [vmem:[%s1213_s6 + $0x98] sm:$0xff]  ;;  %p1020_p11 = scmp.ne.s32.totalorder %s1645_s4, %s1019_s9  ;;  %s1089_s10 = smov [#allocation6]  }
  0x3c   : > { %v1276_v14 = vld [vmem:[%s1213_s6 + $0x90] sm:$0xff]  ;;  %v1279_v15 = vld [vmem:[%s1213_s6 + $0x88] sm:$0xff]  ;;  %v1284_v16 = vld [vmem:[%s1213_s6 + $0x80] sm:$0xff]  ;;  %s1023_s15 = sshll.u32 %s1089_s10, 4  ;;  %s1024_s15 = int_to_ptr.vmem [resolvable:$false] %s1023_s15 }
  0x3d   : > { %199 = vmatpush1.xpose.msra.mxu0 %v1232_v3  ;;  %v1287_v17 = vld [vmem:[%s1213_s6 + $0x78] sm:$0xff]  ;;  %v1292_v18 = vld [vmem:[%s1213_s6 + $0x70] sm:$0xff]  ;;  %v1295_v19 = vld [vmem:[%s1213_s6 + $0x68] sm:$0xff]  ;;  %p1021_p13 = pnand %p1020_p11, %p1702_p12  ;;  %s1025_s17 = scalar_lea.vmem %s1024_s15, 8192 }
  0x3e   : > { %200 = vmatprep.subr.mxu0 %v1235_v4  ;;  %v1300_v20 = vld [vmem:[%s1213_s6 + $0x60] sm:$0xff]  ;;  %v1303_v21 = vld [vmem:[%s1213_s6 + $0x58] sm:$0xff]  ;;  %v1308_v22 = vld [vmem:[%s1213_s6 + $0x50] sm:$0xff]  ;;  %p1026_p5 = scmp.lt.s32.totalorder %s1645_s4, %s1024_s15  ;;  %p1027_p7 = scmp.lt.s32.totalorder %s1025_s17, %s1019_s9 }
  0x3f   : > { %v1311_v23 = vld [vmem:[%s1213_s6 + $0x48] sm:$0xff]  ;;  %v1316_v24 = vld [vmem:[%s1213_s6 + $0x40] sm:$0xff]  ;;  %v1319_v25 = vld [vmem:[%s1213_s6 + $0x38] sm:$0xff]  ;;  %p1022_p4 = pneg %p1021_p13 }
  0x40   : > { %v1324_v26 = vld [vmem:[%s1213_s6 + $0x30] sm:$0xff]  ;;  %v1327_v27 = vld [vmem:[%s1213_s6 + $0x28] sm:$0xff]  ;;  %v1332_v28 = vld [vmem:[%s1213_s6 + $0x20] sm:$0xff]  ;;  %p1028_p8 = por %p1027_p7, %p1026_p5 }
  0x41   : > { %201 = vmatpush1.xpose.msra.mxu0 %v1240_v5  ;;  %v1335_v29 = vld [vmem:[%s1213_s6 + $0x18] sm:$0xff]  ;;  %v1340_v30 = vld [vmem:[%s1213_s6 + $0x10] sm:$0xff]  ;;  %v1345_v31 = vld [vmem:[%s1213_s6] sm:$0xff] }
  0x42   : > { %202 = vmatprep.subr.mxu0 %v1243_v6  ;;  %p1029_p10 = pnand %p1028_p8, %p1022_p4 }
  0x45   : > { %203 = vmatpush1.xpose.msra.mxu0 %v1251_v8 }
  0x46   : > { %204 = vmatprep.subr.mxu0 %v1255_v9 }
  0x49   : > { %205 = vmatpush1.xpose.msra.mxu0 %v1260_v10 }
  0x4a   : > { %206 = vmatprep.subr.mxu0 %v1263_v11 }
  0x4d   : > { %207 = vmatpush1.xpose.msra.mxu0 %v1268_v12 }
  0x4e   : > { %208 = vmatprep.subr.mxu0 %v1271_v13 }
  0x51   : > { %209 = vmatpush1.xpose.msra.mxu0 %v1276_v14 }
  0x52   : > { %210 = vmatprep.subr.mxu0 %v1279_v15 }
  0x55   : > { %211 = vmatpush1.xpose.msra.mxu0 %v1284_v16 }
  0x56   : > { %212 = vmatprep.subr.mxu0 %v1287_v17 }
  0x59   : > { %213 = vmatpush1.xpose.msra.mxu0 %v1292_v18 }
  0x5a   : > { %214 = vmatprep.subr.mxu0 %v1295_v19 }
  0x5d   : > { %215 = vmatpush1.xpose.msra.mxu0 %v1300_v20 }
  0x5e   : > { %216 = vmatprep.subr.mxu0 %v1303_v21 }
  0x61   : > { %217 = vmatpush1.xpose.msra.mxu0 %v1308_v22 }
  0x62   : > { %218 = vmatprep.subr.mxu0 %v1311_v23 }
  0x65   : > { %219 = vmatpush1.xpose.msra.mxu0 %v1316_v24 }
  0x66   : > { %220 = vmatprep.subr.mxu0 %v1319_v25 }
  0x69   : > { %221 = vmatpush1.xpose.msra.mxu0 %v1324_v26 }
  0x6a   : > { %222 = vmatprep.subr.mxu0 %v1327_v27 }
  0x6d   : > { %223 = vmatpush1.xpose.msra.mxu0 %v1332_v28 }
  0x6e   : > { %224 = vmatprep.subr.mxu0 %v1335_v29 }
  0x71   : > { %225 = vmatpush1.xpose.msra.mxu0 %v1340_v30 }
  0x72   : > { %226 = vmatprep.subr.mxu0 %v1247_v7 }
  0x75   : > { %227 = vmatpush1.xpose.msra.mxu0 %v1345_v31 }
  0x78   : > { %261 = vmatmul.mubr.f32.vlgmr.msra.gmra.mxu0 %v1345_v31 }
  0x79   : > { %265 = vmatprep.mubr.f32.mxu0 %v1335_v29 }
  0x7c   : > { %266 = vmatmul.mubr.f32.gmra.mxu0 %v1340_v30 }
  0x7d   : > { %270 = vmatprep.mubr.f32.mxu0 %v1327_v27 }
  0x80   : > { %271 = vmatmul.mubr.f32.gmra.mxu0 %v1332_v28 }
  0x81   : > { %275 = vmatprep.mubr.f32.mxu0 %v1319_v25 }
  0x84   : > { %276 = vmatmul.mubr.f32.gmra.mxu0 %v1324_v26 }
  0x85   : > { %280 = vmatprep.mubr.f32.mxu0 %v1311_v23 }
  0x88   : > { %281 = vmatmul.mubr.f32.gmra.mxu0 %v1316_v24 }
  0x89   : > { %285 = vmatprep.mubr.f32.mxu0 %v1303_v21 }
  0x8c   : > { %286 = vmatmul.mubr.f32.gmra.mxu0 %v1308_v22 }
  0x8d   : > { %290 = vmatprep.mubr.f32.mxu0 %v1295_v19 }
  0x90   : > { %291 = vmatmul.mubr.f32.gmra.mxu0 %v1300_v20 }
  0x91   : > { %295 = vmatprep.mubr.f32.mxu0 %v1287_v17 }
  0x94   : > { %296 = vmatmul.mubr.f32.gmra.mxu0 %v1292_v18 }
  0x95   : > { %300 = vmatprep.mubr.f32.mxu0 %v1279_v15 }
  0x98   : > { %301 = vmatmul.mubr.f32.gmra.mxu0 %v1284_v16 }
  0x99   : > { %305 = vmatprep.mubr.f32.mxu0 %v1271_v13 }
  0x9c   : > { %306 = vmatmul.mubr.f32.gmra.mxu0 %v1276_v14 }
  0x9d   : > { %310 = vmatprep.mubr.f32.mxu0 %v1263_v11 }
  0xa0   : > { %311 = vmatmul.mubr.f32.gmra.mxu0 %v1268_v12 }
  0xa1   : > { %315 = vmatprep.mubr.f32.mxu0 %v1255_v9 }
  0xa4   : > { %316 = vmatmul.mubr.f32.gmra.mxu0 %v1260_v10 }
  0xa5   : > { %320 = vmatprep.mubr.f32.mxu0 %v1243_v6 }
  0xa8   : > { %321 = vmatmul.mubr.f32.gmra.mxu0 %v1251_v8 }
  0xa9   : > { %325 = vmatprep.mubr.f32.mxu0 %v1235_v4 }
  0xac   : > { %326 = vmatmul.mubr.f32.gmra.mxu0 %v1240_v5 }
  0xad   : > { %330 = vmatprep.mubr.f32.mxu0 %v1226_v2 }
  0xb0   : > { %331 = vmatmul.mubr.f32.gmra.mxu0 %v1232_v3 }
  0xb1   : > { %335 = vmatprep.mubr.f32.mxu0 %v1220_v0 }
  0xb4   : > { %336 = vmatmul.mubr.f32.gmra.mxu0 %v1223_v1 }
 0x138   : > { %v262_v32 = vpop.f32.mrf.mxu0 }
 0x139   : > { %341 = vmax.xlane.f32.xlu0 %v262_v32 }
 0x13a   : > { %v264_v33 = vpop.f32.mrf.mxu0 }
 0x13c   : > { %v267_v34 = vpop.f32.mrf.mxu0 }
 0x13d   : > { %343 = vmax.xlane.f32.xlu0 %v267_v34 }
 0x13e   : > { %v269_v35 = vpop.f32.mrf.mxu0 }
 0x140   : > { %v272_v36 = vpop.f32.mrf.mxu0 }
 0x141   : > { %345 = vmax.xlane.f32.xlu1 %v272_v36 }
 0x142   : > { %v274_v37 = vpop.f32.mrf.mxu0 }
 0x144   : > { %v277_v38 = vpop.f32.mrf.mxu0 }
 0x145   : > { %347 = vmax.xlane.f32.xlu1 %v277_v38 }
 0x146   : > { %v279_v39 = vpop.f32.mrf.mxu0 }
 0x148   : > { %v282_v40 = vpop.f32.mrf.mxu0 }
 0x149   : > { %349 = vmax.xlane.f32.xlu0 %v282_v40 }
 0x14a   : > { %v284_v41 = vpop.f32.mrf.mxu0 }
 0x14c   : > { %v287_v42 = vpop.f32.mrf.mxu0 }
 0x14d   : > { %351 = vmax.xlane.f32.xlu1 %v287_v42 }
 0x14e   : > { %v289_v43 = vpop.f32.mrf.mxu0 }
 0x150   : > { %v292_v44 = vpop.f32.mrf.mxu0 }
 0x151   : > { %353 = vmax.xlane.f32.xlu0 %v292_v44 }
 0x152   : > { %v294_v45 = vpop.f32.mrf.mxu0 }
 0x154   : > { %v297_v46 = vpop.f32.mrf.mxu0 }
 0x155   : > { %355 = vmax.xlane.f32.xlu1 %v297_v46 }
 0x156   : > { %v299_v47 = vpop.f32.mrf.mxu0 }
 0x158   : > { %v302_v48 = vpop.f32.mrf.mxu0 }
 0x159   : > { %357 = vmax.xlane.f32.xlu0 %v302_v48 }
 0x15a   : > { %v304_v49 = vpop.f32.mrf.mxu0 }
 0x15c   : > { %v307_v50 = vpop.f32.mrf.mxu0 }
 0x15d   : > { %359 = vmax.xlane.f32.xlu1 %v307_v50 }
 0x15e   : > { %v309_v51 = vpop.f32.mrf.mxu0 }
 0x160   : > { %v312_v52 = vpop.f32.mrf.mxu0 }
 0x161   : > { %361 = vmax.xlane.f32.xlu0 %v312_v52 }
 0x162   : > { %v314_v53 = vpop.f32.mrf.mxu0 }
 0x164   : > { %v317_v54 = vpop.f32.mrf.mxu0 }
 0x165   : > { %363 = vmax.xlane.f32.xlu1 %v317_v54 }
 0x166   : > { %v319_v55 = vpop.f32.mrf.mxu0 }
 0x168   : > { %v322_v56 = vpop.f32.mrf.mxu0 }
 0x169   : > { %365 = vmax.xlane.f32.xlu0 %v322_v56 }
 0x16a   : > { %v324_v57 = vpop.f32.mrf.mxu0 }
 0x16c   : > { %v327_v58 = vpop.f32.mrf.mxu0 }
 0x16d   : > { %367 = vmax.xlane.f32.xlu1 %v327_v58 }
 0x16e   : > { %v329_v59 = vpop.f32.mrf.mxu0 }
 0x170   : > { %v332_v60 = vpop.f32.mrf.mxu0 }
 0x171   : > { %369 = vmax.xlane.f32.xlu0 %v332_v60 }
 0x172   : > { %v334_v61 = vpop.f32.mrf.mxu0 }
 0x174   : > { %v337_v62 = vpop.f32.mrf.mxu0 }
 0x175   : > { %371 = vmax.xlane.f32.xlu1 %v337_v62 }
 0x176   : > { %v339_v63 = vpop.f32.mrf.mxu0 }
 0x1c2   : > { %v342_v33 = vpop.xlane.xlu0 %341 }
 0x1c3   : > { %v373_v35 = vsub.f32 %v342_v33, %v262_v32 }
 0x1c5   : > { %389 = vmax.xlane.f32.xlu0 %v373_v35 }
 0x1c6   : > { %v344_v37 = vpop.xlane.xlu0 %343 }
 0x1c7   : > { %v374_v39 = vsub.f32 %v344_v37, %v267_v34 }
 0x1c9   : > { %391 = vmax.xlane.f32.xlu1 %v374_v39 }
 0x1ca   : > { %v346_v41 = vpop.xlane.xlu1 %345 }
 0x1cb   : > { %v1379_v43 = vsub.f32 %v346_v41, %v272_v36 }
 0x1cd   : > { %393 = vmax.xlane.f32.xlu0 %v1379_v43 }
 0x1ce   : > { %v348_v45 = vpop.xlane.xlu1 %347 }
 0x1cf   : > { %v1382_v47 = vsub.f32 %v348_v45, %v277_v38 }
 0x1d1   : > { %395 = vmax.xlane.f32.xlu1 %v1382_v47 }
 0x1d2   : > { %v350_v49 = vpop.xlane.xlu0 %349 }
 0x1d3   : > { %v1385_v51 = vsub.f32 %v350_v49, %v282_v40  ;;  %v555_v49 = vpack.c.bf16 %v1223_v1, %v1232_v3 }
 0x1d5   : > { %397 = vmax.xlane.f32.xlu0 %v1385_v51 }
 0x1d6   : > { %v352_v32 = vpop.xlane.xlu1 %351 }
 0x1d7   : > { %v1388_v53 = vsub.f32 %v352_v32, %v287_v42  ;;  %v551_v32 = vpack.c.bf16 %v1260_v10, %v1268_v12 }
 0x1d9   : > { %399 = vmax.xlane.f32.xlu1 %v1388_v53 }
 0x1da   : > { %v354_v34 = vpop.xlane.xlu0 %353 }
 0x1db   : > { %v1391_v36 = vsub.f32 %v354_v34, %v292_v44 }
 0x1dd   : > { %401 = vmax.xlane.f32.xlu0 %v1391_v36 }
 0x1de   : > { %v356_v55 = vpop.xlane.xlu1 %355 }
 0x1df   : > { %v1394_v38 = vsub.f32 %v356_v55, %v297_v46 }
 0x1e1   : > { %403 = vmax.xlane.f32.xlu1 %v1394_v38 }
 0x1e2   : > { %v358_v57 = vpop.xlane.xlu0 %357 }
 0x1e3   : > { %v1397_v40 = vsub.f32 %v358_v57, %v302_v48 }
 0x1e5   : > { %405 = vmax.xlane.f32.xlu0 %v1397_v40 }
 0x1e6   : > { %v360_v59 = vpop.xlane.xlu1 %359 }
 0x1e7   : > { %v1400_v42 = vsub.f32 %v360_v59, %v307_v50 }
 0x1e9   : > { %407 = vmax.xlane.f32.xlu1 %v1400_v42 }
 0x1ea   : > { %v362_v61 = vpop.xlane.xlu0 %361 }
 0x1eb   : > { %v1403_v44 = vsub.f32 %v362_v61, %v312_v52 }
 0x1ed   : > { %409 = vmax.xlane.f32.xlu0 %v1403_v44 }
 0x1ee   : > { %v364_v63 = vpop.xlane.xlu1 %363 }
 0x1ef   : > { %v1406_v46 = vsub.f32 %v364_v63, %v317_v54 }
 0x1f1   : > { %411 = vmax.xlane.f32.xlu1 %v1406_v46 }
 0x1f2   : > { %v366_v33 = vpop.xlane.xlu0 %365 }
 0x1f3   : > { %v1409_v48 = vsub.f32 %v366_v33, %v322_v56  ;;  %v556_v56 = vpack.c.bf16 %v1220_v0, %v1226_v2 }
 0x1f5   : > { %413 = vmax.xlane.f32.xlu0 %v1409_v48  ;;  %557 = vmatprep.subr.bf16.mxu1 %v556_v56 }
 0x1f6   : > { %v368_v37 = vpop.xlane.xlu1 %367  ;;  %558 = vmatpush1.bf16.msra.mxu1 %v555_v49 }
 0x1f7   : > { %v1412_v50 = vsub.f32 %v368_v37, %v327_v58  ;;  %v554_v58 = vpack.c.bf16 %v1235_v4, %v1243_v6 }
 0x1f9   : > { %415 = vmax.xlane.f32.xlu1 %v1412_v50  ;;  %559 = vmatprep.subr.bf16.mxu1 %v554_v58 }
 0x1fa   : > { %v370_v41 = vpop.xlane.xlu0 %369 }
 0x1fb   : > { %v1415_v52 = vsub.f32 %v370_v41, %v332_v60  ;;  %v553_v60 = vpack.c.bf16 %v1240_v5, %v1251_v8 }
 0x1fd   : > { %417 = vmax.xlane.f32.xlu0 %v1415_v52  ;;  %560 = vmatpush1.bf16.msra.mxu1 %v553_v60 }
 0x1fe   : > { %v372_v45 = vpop.xlane.xlu1 %371 }
 0x1ff   : > { %v1418_v54 = vsub.f32 %v372_v45, %v337_v62  ;;  %v552_v62 = vpack.c.bf16 %v1255_v9, %v1263_v11 }
 0x201   : > { %419 = vmax.xlane.f32.xlu1 %v1418_v54  ;;  %561 = vmatprep.subr.bf16.mxu1 %v552_v62 }
 0x202   : > { %562 = vmatpush1.bf16.msra.mxu1 %v551_v32 }
 0x24e   : > { %v390_v0 = vpop.xlane.xlu0 %389 }
 0x24f   : > { %v421_v1 = vsub.f32 %v373_v35, %v390_v0  ;;  %v549_v0 = vpack.c.bf16 %v1276_v14, %v1284_v16 }
 0x251   : > { %v437_v2 = vmul.f32 1.442695, %v421_v1 }
 0x252   : > { %v392_v3 = vpop.xlane.xlu1 %391 }
 0x253   : > { %922 = vpow2.f32 %v437_v2  ;;  %v422_v4 = vsub.f32 %v374_v39, %v392_v3 }
 0x255   : > { %v439_v34 = vmul.f32 1.442695, %v422_v4  ;;  %v547_v4 = vpack.c.bf16 %v1292_v18, %v1300_v20 }
 0x256   : > { %v394_v55 = vpop.xlane.xlu0 %393 }
 0x257   : > { %924 = vpow2.f32 %v439_v34  ;;  %v423_v57 = vsub.f32 %v1379_v43, %v394_v55 }
 0x259   : > { %v441_v59 = vmul.f32 1.442695, %v423_v57 }
 0x25a   : > { %v396_v61 = vpop.xlane.xlu1 %395 }
 0x25b   : > { %926 = vpow2.f32 %v441_v59  ;;  %v424_v63 = vsub.f32 %v1382_v47, %v396_v61  ;;  %v545_v61 = vpack.c.bf16 %v1308_v22, %v1316_v24 }
 0x25d   : > { %v443_v33 = vmul.f32 1.442695, %v424_v63 }
 0x25e   : > { %v398_v37 = vpop.xlane.xlu0 %397 }
 0x25f   : > { %928 = vpow2.f32 %v443_v33  ;;  %v425_v41 = vsub.f32 %v1385_v51, %v398_v37 }
 0x260   : > { %v1436_v35 = vpop.eup %922 }
 0x261   : > { %v445_v45 = vmul.f32 1.442695, %v425_v41  ;;  %469 = vadd.xlane.f32.xlu0 %v1436_v35 }
 0x262   : > { %v400_v39 = vpop.xlane.xlu1 %399 }
 0x263   : > { %930 = vpow2.f32 %v445_v45  ;;  %v426_v56 = vsub.f32 %v1388_v53, %v400_v39  ;;  %v550_v53 = vpack.c.bf16 %v1271_v13, %v1279_v15  ;;  %v543_v45 = vpack.c.bf16 %v1324_v26, %v1332_v28 }
 0x264   : > { %v1440_v43 = vpop.eup %924 }
 0x265   : > { %v447_v49 = vmul.f32 1.442695, %v426_v56  ;;  %471 = vadd.xlane.f32.xlu1 %v1440_v43  ;;  %563 = vmatprep.subr.bf16.mxu1 %v550_v53 }
 0x266   : > { %v402_v47 = vpop.xlane.xlu0 %401  ;;  %564 = vmatpush1.bf16.msra.mxu1 %v549_v0 }
 0x267   : > { %932 = vpow2.f32 %v447_v49  ;;  %v427_v58 = vsub.f32 %v1391_v36, %v402_v47 }
 0x268   : > { %v1444_v60 = vpop.eup %926 }
 0x269   : > { %v449_v51 = vmul.f32 1.442695, %v427_v58  ;;  %473 = vadd.xlane.f32.xlu0 %v1444_v60  ;;  %v541_v58 = vpack.c.bf16 %v1340_v30, %v1345_v31 }
 0x26a   : > { %v404_v62 = vpop.xlane.xlu1 %403 }
 0x26b   : > { %934 = vpow2.f32 %v449_v51  ;;  %v428_v32 = vsub.f32 %v1394_v38, %v404_v62  ;;  %v548_v38 = vpack.c.bf16 %v1287_v17, %v1295_v19 }
 0x26c   : > { %v1452_v1 = vpop.eup %928 }
 0x26d   : > { %v451_v2 = vmul.f32 1.442695, %v428_v32  ;;  %475 = vadd.xlane.f32.xlu1 %v1452_v1  ;;  %565 = vmatprep.subr.bf16.mxu1 %v548_v38 }
 0x26e   : > { %v406_v36 = vpop.xlane.xlu0 %405  ;;  %566 = vmatpush1.bf16.msra.mxu1 %v547_v4 }
 0x26f   : > { %936 = vpow2.f32 %v451_v2  ;;  %v429_v3 = vsub.f32 %v1397_v40, %v406_v36  ;;  %v546_v40 = vpack.c.bf16 %v1303_v21, %v1311_v23 }
 0x270   : > { %v1460_v34 = vpop.eup %930 }
 0x271   : > { %v453_v55 = vmul.f32 1.442695, %v429_v3  ;;  %477 = vadd.xlane.f32.xlu0 %v1460_v34  ;;  %567 = vmatprep.subr.bf16.mxu1 %v546_v40 }
 0x272   : > { %v408_v57 = vpop.xlane.xlu1 %407  ;;  %568 = vmatpush1.bf16.msra.mxu1 %v545_v61 }
 0x273   : > { %938 = vpow2.f32 %v453_v55  ;;  %v430_v59 = vsub.f32 %v1400_v42, %v408_v57  ;;  %v544_v42 = vpack.c.bf16 %v1319_v25, %v1327_v27 }
 0x274   : > { %v1468_v63 = vpop.eup %932 }
 0x275   : > { %v455_v33 = vmul.f32 1.442695, %v430_v59  ;;  %479 = vadd.xlane.f32.xlu1 %v1468_v63  ;;  %569 = vmatprep.subr.bf16.mxu1 %v544_v42 }
 0x276   : > { %v410_v37 = vpop.xlane.xlu0 %409  ;;  %570 = vmatpush1.bf16.msra.mxu1 %v543_v45 }
 0x277   : > { %940 = vpow2.f32 %v455_v33  ;;  %v431_v41 = vsub.f32 %v1403_v44, %v410_v37  ;;  %v542_v44 = vpack.c.bf16 %v1335_v29, %v1247_v7 }
 0x278   : > { %v1476_v39 = vpop.eup %934 }
 0x279   : > { %v457_v56 = vmul.f32 1.442695, %v431_v41  ;;  %481 = vadd.xlane.f32.xlu0 %v1476_v39  ;;  %571 = vmatprep.subr.bf16.mxu1 %v542_v44 }
 0x27a   : > { %v412_v49 = vpop.xlane.xlu1 %411  ;;  %572 = vmatpush1.bf16.msra.mxu1 %v541_v58 }
 0x27b   : > { %942 = vpow2.f32 %v457_v56  ;;  %v432_v47 = vsub.f32 %v1406_v46, %v412_v49  ;;  %v1088_v46 = vmov 0  }
 0x27c   : > { %v1484_v51 = vpop.eup %936  ;;  %589 = vmatprep.mubr.bf16.mxu1 %v1088_v46 }
 0x27d   : > { %v459_v62 = vmul.f32 1.442695, %v432_v47  ;;  %483 = vadd.xlane.f32.xlu1 %v1484_v51 }
 0x27e   : > { %v414_v32 = vpop.xlane.xlu0 %413 }
 0x27f   : > { %944 = vpow2.f32 %v459_v62  ;;  %v433_v53 = vsub.f32 %v1409_v48, %v414_v32 }
 0x280   : > { %v1488_v0 = vpop.eup %938 }
 0x281   : > { %v461_v2 = vmul.f32 1.442695, %v433_v53  ;;  %485 = vadd.xlane.f32.xlu0 %v1488_v0 }
 0x282   : > { %v416_v36 = vpop.xlane.xlu1 %415 }
 0x283   : > { %946 = vpow2.f32 %v461_v2  ;;  %v434_v3 = vsub.f32 %v1412_v50, %v416_v36 }
 0x284   : > { %v1493_v38 = vpop.eup %940 }
 0x285   : > { %v463_v4 = vmul.f32 1.442695, %v434_v3  ;;  %487 = vadd.xlane.f32.xlu1 %v1493_v38 }
 0x286   : > { %v418_v55 = vpop.xlane.xlu0 %417 }
 0x287   : > { %948 = vpow2.f32 %v463_v4  ;;  %v435_v48 = vsub.f32 %v1415_v52, %v418_v55 }
 0x288   : > { %v1497_v57 = vpop.eup %942 }
 0x289   : > { %v465_v59 = vmul.f32 1.442695, %v435_v48  ;;  %489 = vadd.xlane.f32.xlu0 %v1497_v57 }
 0x28a   : > { %v420_v40 = vpop.xlane.xlu1 %419 }
 0x28b   : > { %950 = vpow2.f32 %v465_v59  ;;  %v436_v61 = vsub.f32 %v1418_v54, %v420_v40 }
 0x28c   : > { %v1501_v33 = vpop.eup %944 }
 0x28d   : > { %v467_v50 = vmul.f32 1.442695, %v436_v61  ;;  %491 = vadd.xlane.f32.xlu1 %v1501_v33 }
 0x28f   : > { %952 = vpow2.f32 %v467_v50 }
 0x290   : > { %v1504_v37 = vpop.eup %946 }
 0x291   : > { %493 = vadd.xlane.f32.xlu0 %v1504_v37 }
 0x294   : > { %v1507_v52 = vpop.eup %948 }
 0x295   : > { %495 = vadd.xlane.f32.xlu1 %v1507_v52 }
 0x298   : > { %v1510_v41 = vpop.eup %950 }
 0x299   : > { %497 = vadd.xlane.f32.xlu0 %v1510_v41 }
 0x29c   : > { %v1513_v42 = vpop.eup %952 }
 0x29d   : > { %499 = vadd.xlane.f32.xlu1 %v1513_v42 }
 0x2ea   : > { %v470_v54 = vpop.xlane.xlu0 %469 }
 0x2eb   : > { %954 = vrcp.f32 %v470_v54 }
 0x2ee   : > { %v472_v45 = vpop.xlane.xlu1 %471 }
 0x2ef   : > { %956 = vrcp.f32 %v472_v45 }
 0x2f2   : > { %v474_v56 = vpop.xlane.xlu0 %473 }
 0x2f3   : > { %958 = vrcp.f32 %v474_v56 }
 0x2f6   : > { %v476_v49 = vpop.xlane.xlu1 %475 }
 0x2f7   : > { %960 = vrcp.f32 %v476_v49 }
 0x2f8   : > { %v955_v47 = vpop.eup %954 }
 0x2f9   : > { %v502_v62 = vmul.f32 %v955_v47, %v1436_v35 }
 0x2fa   : > { %v478_v44 = vpop.xlane.xlu0 %477 }
 0x2fb   : > { %962 = vrcp.f32 %v478_v44 }
 0x2fc   : > { %v957_v58 = vpop.eup %956 }
 0x2fd   : > { %v504_v32 = vmul.f32 %v957_v58, %v1440_v43 }
 0x2fe   : > { %v480_v53 = vpop.xlane.xlu1 %479 }
 0x2ff   : > { %964 = vrcp.f32 %v480_v53  ;;  %v533_v2 = vpack.c.bf16 %v504_v32, %v502_v62 }
 0x300   : > { %v959_v36 = vpop.eup %958 }
 0x301   : > { %590 = vmatmul.mubr.bf16.vlgmr.msra.gmra.mxu1 %v533_v2  ;;  %v506_v55 = vmul.f32 %v959_v36, %v1444_v60 }
 0x302   : > { %v482_v3 = vpop.xlane.xlu0 %481  ;;  %599 = vmatprep.mubr.bf16.mxu1 %v1088_v46 }
 0x303   : > { %966 = vrcp.f32 %v482_v3 }
 0x304   : > { %v961_v4 = vpop.eup %960 }
 0x305   : > { %v508_v48 = vmul.f32 %v961_v4, %v1452_v1 }
 0x306   : > { %v484_v59 = vpop.xlane.xlu1 %483 }
 0x307   : > { %968 = vrcp.f32 %v484_v59  ;;  %v534_v40 = vpack.c.bf16 %v508_v48, %v506_v55 }
 0x308   : > { %v963_v35 = vpop.eup %962 }
 0x309   : > { %600 = vmatmul.mubr.bf16.gmra.mxu1 %v534_v40  ;;  %v510_v50 = vmul.f32 %v963_v35, %v1460_v34 }
 0x30a   : > { %v486_v43 = vpop.xlane.xlu0 %485  ;;  %609 = vmatprep.mubr.bf16.mxu1 %v1088_v46 }
 0x30b   : > { %970 = vrcp.f32 %v486_v43 }
 0x30c   : > { %v965_v61 = vpop.eup %964 }
 0x30d   : > { %v512_v54 = vmul.f32 %v965_v61, %v1468_v63 }
 0x30e   : > { %v488_v45 = vpop.xlane.xlu1 %487 }
 0x30f   : > { %972 = vrcp.f32 %v488_v45  ;;  %v535_v56 = vpack.c.bf16 %v512_v54, %v510_v50 }
 0x310   : > { %v967_v60 = vpop.eup %966 }
 0x311   : > { %610 = vmatmul.mubr.bf16.gmra.mxu1 %v535_v56  ;;  %v514_v47 = vmul.f32 %v967_v60, %v1476_v39  ;;  %v1539_v56 = vstv %s670_s21 }
 0x312   : > { %v490_v1 = vpop.xlane.xlu0 %489  ;;  %619 = vmatprep.mubr.bf16.mxu1 %v1088_v46 }
 0x313   : > { %974 = vrcp.f32 %v490_v1 }
 0x314   : > { %v969_v49 = vpop.eup %968 }
 0x315   : > { %v516_v44 = vmul.f32 %v969_v49, %v1484_v51 }
 0x316   : > { %v492_v58 = vpop.xlane.xlu1 %491 }
 0x317   : > { %976 = vrcp.f32 %v492_v58  ;;  %v536_v62 = vpack.c.bf16 %v516_v44, %v514_v47 }
 0x318   : > { %v971_v34 = vpop.eup %970 }
 0x319   : > { %620 = vmatmul.mubr.bf16.gmra.mxu1 %v536_v62  ;;  %v518_v53 = vmul.f32 %v971_v34, %v1488_v0 }
 0x31a   : > { %v494_v63 = vpop.xlane.xlu0 %493  ;;  %629 = vmatprep.mubr.bf16.mxu1 %v1088_v46 }
 0x31b   : > { %978 = vrcp.f32 %v494_v63 }
 0x31c   : > { %v973_v32 = vpop.eup %972 }
 0x31d   : > { %v520_v2 = vmul.f32 %v973_v32, %v1493_v38 }
 0x31e   : > { %v496_v36 = vpop.xlane.xlu1 %495 }
 0x31f   : > { %980 = vrcp.f32 %v496_v36  ;;  %v537_v3 = vpack.c.bf16 %v520_v2, %v518_v53 }
 0x320   : > { %v975_v39 = vpop.eup %974 }
 0x321   : > { %630 = vmatmul.mubr.bf16.gmra.mxu1 %v537_v3  ;;  %v522_v55 = vmul.f32 %v975_v39, %v1497_v57 }
 0x322   : > { %v498_v51 = vpop.xlane.xlu0 %497  ;;  %639 = vmatprep.mubr.bf16.mxu1 %v1088_v46 }
 0x323   : > { %982 = vrcp.f32 %v498_v51 }
 0x324   : > { %v977_v4 = vpop.eup %976 }
 0x325   : > { %v524_v48 = vmul.f32 %v977_v4, %v1501_v33 }
 0x326   : > { %v500_v59 = vpop.xlane.xlu1 %499 }
 0x327   : > { %984 = vrcp.f32 %v500_v59  ;;  %v538_v40 = vpack.c.bf16 %v524_v48, %v522_v55 }
 0x328   : > { %v979_v0 = vpop.eup %978 }
 0x329   : > { %640 = vmatmul.mubr.bf16.gmra.mxu1 %v538_v40  ;;  %v526_v35 = vmul.f32 %v979_v0, %v1504_v37 }
 0x32a   : > { %649 = vmatprep.mubr.bf16.mxu1 %v1088_v46 }
 0x32c   : > { %v981_v38 = vpop.eup %980 }
 0x32d   : > { %v528_v43 = vmul.f32 %v981_v38, %v1507_v52 }
 0x32f   : > { %v539_v61 = vpack.c.bf16 %v528_v43, %v526_v35 }
 0x330   : > { %v983_v50 = vpop.eup %982 }
 0x331   : > { %650 = vmatmul.mubr.bf16.gmra.mxu1 %v539_v61  ;;  %v530_v33 = vmul.f32 %v983_v50, %v1510_v41 }
 0x332   : > { %659 = vmatprep.mubr.bf16.mxu1 %v1088_v46 }
 0x334   : > { %v985_v57 = vpop.eup %984 }
 0x335   : > { %v532_v54 = vmul.f32 %v985_v57, %v1513_v42 }
 0x337   : > { %v540_v45 = vpack.c.bf16 %v532_v54, %v530_v33 }
 0x339   : > { %660 = vmatmul.mubr.bf16.gmra.mxu1 %v540_v45 }
 0x3c1   : > { %v591_v60 = vpop.f32.mrf.mxu1 }
 0x3c2   : > { %v672_v37 = vmul.f32 %v1539_v56, %v591_v60 }
 0x3c3   : > { %v593_v52 = vpop.f32.mrf.mxu1 }
 0x3c4   : > { %v704_v1 = vadd.f32 %v672_v37, %v1345_v31  ;;  %v673_v49 = vmul.f32 %v1539_v56, %v593_v52 }
 0x3c5   : > { %v595_v47 = vpop.f32.mrf.mxu1 }
 0x3c6   : > { %736 = vst [vmem:[%s1546_s29] sm:$0xff] %v704_v1  ;;  %v705_v46 = vadd.f32 %v673_v49, %v1247_v7  ;;  %v674_v41 = vmul.f32 %v1539_v56, %v595_v47 }
 0x3c7   : > { %v597_v42 = vpop.f32.mrf.mxu1 }
 0x3c8   : > { %737 = vst [vmem:[%s1546_s29 + $0x8] sm:$0xff] %v705_v46  ;;  %v706_v31 = vadd.f32 %v674_v41, %v1340_v30  ;;  %v675_v44 = vmul.f32 %v1539_v56, %v597_v42 }
 0x3c9   : > { %v601_v58 = vpop.f32.mrf.mxu1 }
 0x3ca   : > { %738 = vst [vmem:[%s1546_s29 + $0x10] sm:$0xff] %v706_v31  ;;  %v707_v62 = vadd.f32 %v675_v44, %v1335_v29  ;;  %v676_v34 = vmul.f32 %v1539_v56, %v601_v58 }
 0x3cb   : > { %v603_v63 = vpop.f32.mrf.mxu1 }
 0x3cc   : > { %739 = vst [vmem:[%s1546_s29 + $0x18] sm:$0xff] %v707_v62  ;;  %v708_v7 = vadd.f32 %v676_v34, %v1332_v28  ;;  %v677_v32 = vmul.f32 %v1539_v56, %v603_v63 }
 0x3cd   : > { %v605_v53 = vpop.f32.mrf.mxu1 }
 0x3ce   : > { %740 = vst [vmem:[%s1546_s29 + $0x20] sm:$0xff] %v708_v7  ;;  %v709_v30 = vadd.f32 %v677_v32, %v1327_v27  ;;  %v678_v2 = vmul.f32 %v1539_v56, %v605_v53 }
 0x3cf   : > { %v607_v36 = vpop.f32.mrf.mxu1 }
 0x3d0   : > { %741 = vst [vmem:[%s1546_s29 + $0x28] sm:$0xff] %v709_v30  ;;  %v710_v29 = vadd.f32 %v678_v2, %v1324_v26  ;;  %v679_v3 = vmul.f32 %v1539_v56, %v607_v36 }
 0x3d1   : > { %v611_v39 = vpop.f32.mrf.mxu1 }
 0x3d2   : > { %742 = vst [vmem:[%s1546_s29 + $0x30] sm:$0xff] %v710_v29  ;;  %v711_v28 = vadd.f32 %v679_v3, %v1319_v25  ;;  %v680_v51 = vmul.f32 %v1539_v56, %v611_v39  ;;  %v986_v39 = vld [vmem:[%s1213_s6 + $0xd8] sm:$0xff] }
 0x3d3   : > { %v613_v4 = vpop.f32.mrf.mxu1 }
 0x3d4   : > { %743 = vst [vmem:[%s1546_s29 + $0x38] sm:$0xff] %v711_v28  ;;  %v712_v27 = vadd.f32 %v680_v51, %v1316_v24  ;;  %v681_v55 = vmul.f32 %v1539_v56, %v613_v4  ;;  %v987_v4 = vld [vmem:[%s1213_s6 + $0xe0] sm:$0xff] }
 0x3d5   : > { %v615_v48 = vpop.f32.mrf.mxu1 }
 0x3d6   : > { %744 = vst [vmem:[%s1546_s29 + $0x40] sm:$0xff] %v712_v27  ;;  %v713_v26 = vadd.f32 %v681_v55, %v1311_v23  ;;  %v682_v59 = vmul.f32 %v1539_v56, %v615_v48  ;;  %v988_v48 = vld [vmem:[%s1213_s6 + $0xe8] sm:$0xff] }
 0x3d7   : > { %v617_v40 = vpop.f32.mrf.mxu1 }
 0x3d8   : > { %745 = vst [vmem:[%s1546_s29 + $0x48] sm:$0xff] %v713_v26  ;;  %v714_v25 = vadd.f32 %v682_v59, %v1308_v22  ;;  %v683_v0 = vmul.f32 %v1539_v56, %v617_v40 }
 0x3d9   : > { %v621_v38 = vpop.f32.mrf.mxu1 }
 0x3da   : > { %746 = vst [vmem:[%s1546_s29 + $0x50] sm:$0xff] %v714_v25  ;;  %v715_v24 = vadd.f32 %v683_v0, %v1303_v21  ;;  %v684_v35 = vmul.f32 %v1539_v56, %v621_v38  ;;  %v989_v25 = vld [vmem:[%s1213_s6 + $0xf0] sm:$0xff] }
 0x3db   : > { %v623_v43 = vpop.f32.mrf.mxu1 }
 0x3dc   : > { %747 = vst [vmem:[%s1546_s29 + $0x58] sm:$0xff] %v715_v24  ;;  %v716_v23 = vadd.f32 %v684_v35, %v1300_v20  ;;  %v685_v61 = vmul.f32 %v1539_v56, %v623_v43  ;;  %v990_v24 = vld [vmem:[%s1213_s6 + $0xf8] sm:$0xff] }
 0x3dd   : > { %v625_v50 = vpop.f32.mrf.mxu1 }
 0x3de   : > { %748 = vst [vmem:[%s1546_s29 + $0x60] sm:$0xff] %v716_v23  ;;  %v717_v22 = vadd.f32 %v685_v61, %v1295_v19  ;;  %v686_v57 = vmul.f32 %v1539_v56, %v625_v50 }
 0x3df   : > { %v627_v33 = vpop.f32.mrf.mxu1 }
 0x3e0   : > { %749 = vst [vmem:[%s1546_s29 + $0x68] sm:$0xff] %v717_v22  ;;  %v718_v21 = vadd.f32 %v686_v57, %v1292_v18  ;;  %v687_v54 = vmul.f32 %v1539_v56, %v627_v33 }
 0x3e1   : > { %v631_v45 = vpop.f32.mrf.mxu1 }
 0x3e2   : > { %750 = vst [vmem:[%s1546_s29 + $0x70] sm:$0xff] %v718_v21  ;;  %v719_v20 = vadd.f32 %v687_v54, %v1287_v17  ;;  %v688_v60 = vmul.f32 %v1539_v56, %v631_v45 }
 0x3e3   : > { %v633_v37 = vpop.f32.mrf.mxu1 }
 0x3e4   : > { %751 = vst [vmem:[%s1546_s29 + $0x78] sm:$0xff] %v719_v20  ;;  %v720_v19 = vadd.f32 %v688_v60, %v1284_v16  ;;  %v689_v52 = vmul.f32 %v1539_v56, %v633_v37 }
 0x3e5   : > { %v635_v1 = vpop.f32.mrf.mxu1 }
 0x3e6   : > { %752 = vst [vmem:[%s1546_s29 + $0x80] sm:$0xff] %v720_v19  ;;  %v721_v18 = vadd.f32 %v689_v52, %v1279_v15  ;;  %v690_v49 = vmul.f32 %v1539_v56, %v635_v1 }
 0x3e7   : > { %v637_v47 = vpop.f32.mrf.mxu1 }
 0x3e8   : > { %753 = vst [vmem:[%s1546_s29 + $0x88] sm:$0xff] %v721_v18  ;;  %v722_v17 = vadd.f32 %v690_v49, %v1276_v14  ;;  %v691_v46 = vmul.f32 %v1539_v56, %v637_v47 }
 0x3e9   : > { %v641_v41 = vpop.f32.mrf.mxu1 }
 0x3ea   : > { %754 = vst [vmem:[%s1546_s29 + $0x90] sm:$0xff] %v722_v17  ;;  %v723_v16 = vadd.f32 %v691_v46, %v1271_v13  ;;  %v692_v42 = vmul.f32 %v1539_v56, %v641_v41 }
 0x3eb   : > { %v643_v31 = vpop.f32.mrf.mxu1 }
 0x3ec   : > { %755 = vst [vmem:[%s1546_s29 + $0x98] sm:$0xff] %v723_v16  ;;  %v724_v15 = vadd.f32 %v692_v42, %v1268_v12  ;;  %v693_v44 = vmul.f32 %v1539_v56, %v643_v31 }
 0x3ed   : > { %v645_v58 = vpop.f32.mrf.mxu1 }
 0x3ee   : > { %756 = vst [vmem:[%s1546_s29 + $0xa0] sm:$0xff] %v724_v15  ;;  %v725_v14 = vadd.f32 %v693_v44, %v1263_v11  ;;  %v694_v62 = vmul.f32 %v1539_v56, %v645_v58 }
 0x3ef   : > { %v647_v34 = vpop.f32.mrf.mxu1 }
 0x3f0   : > { %757 = vst [vmem:[%s1546_s29 + $0xa8] sm:$0xff] %v725_v14  ;;  %v726_v13 = vadd.f32 %v694_v62, %v1260_v10  ;;  %v695_v63 = vmul.f32 %v1539_v56, %v647_v34 }
 0x3f1   : > { %v651_v7 = vpop.f32.mrf.mxu1 }
 0x3f2   : > { %758 = vst [vmem:[%s1546_s29 + $0xb0] sm:$0xff] %v726_v13  ;;  %v727_v12 = vadd.f32 %v695_v63, %v1255_v9  ;;  %v696_v32 = vmul.f32 %v1539_v56, %v651_v7 }
 0x3f3   : > { %v653_v53 = vpop.f32.mrf.mxu1 }
 0x3f4   : > { %759 = vst [vmem:[%s1546_s29 + $0xb8] sm:$0xff] %v727_v12  ;;  %v728_v11 = vadd.f32 %v696_v32, %v1251_v8  ;;  %v697_v30 = vmul.f32 %v1539_v56, %v653_v53 }
 0x3f5   : > { %v655_v2 = vpop.f32.mrf.mxu1 }
 0x3f6   : > { %760 = vst [vmem:[%s1546_s29 + $0xc0] sm:$0xff] %v728_v11  ;;  %v729_v10 = vadd.f32 %v697_v30, %v1243_v6  ;;  %v698_v36 = vmul.f32 %v1539_v56, %v655_v2 }
 0x3f7   : > { %v657_v29 = vpop.f32.mrf.mxu1 }
 0x3f8   : > { %761 = vst [vmem:[%s1546_s29 + $0xc8] sm:$0xff] %v729_v10  ;;  %v730_v9 = vadd.f32 %v698_v36, %v1240_v5  ;;  %v699_v3 = vmul.f32 %v1539_v56, %v657_v29 }
 0x3f9   : > { %v661_v8 = vpop.f32.mrf.mxu1 }
 0x3fa   : > { %762 = vst [vmem:[%s1546_s29 + $0xd0] sm:$0xff] %v730_v9  ;;  %v731_v28 = vadd.f32 %v986_v39, %v699_v3  ;;  %v700_v6 = vmul.f32 %v1539_v56, %v661_v8 }
 0x3fb   : > { %v663_v51 = vpop.f32.mrf.mxu1 }
 0x3fc   : > { %763 = vst [vmem:[%s1546_s29 + $0xd8] sm:$0xff] %v731_v28  ;;  %v732_v27 = vadd.f32 %v987_v4, %v700_v6  ;;  %v701_v55 = vmul.f32 %v1539_v56, %v663_v51 }
 0x3fd   : > { %v665_v5 = vpop.f32.mrf.mxu1 }
 0x3fe   : > { %764 = vst [vmem:[%s1546_s29 + $0xe0] sm:$0xff] %v732_v27  ;;  %v733_v26 = vadd.f32 %v988_v48, %v701_v55  ;;  %v702_v59 = vmul.f32 %v1539_v56, %v665_v5 }
 0x3ff   : > { %v667_v40 = vpop.f32.mrf.mxu1 }
 0x400   : > { %765 = vst [vmem:[%s1546_s29 + $0xe8] sm:$0xff] %v733_v26  ;;  %v734_v0 = vadd.f32 %v989_v25, %v702_v59  ;;  %v703_v38 = vmul.f32 %v1539_v56, %v667_v40 }
 0x402   : > { %766 = vst [vmem:[%s1546_s29 + $0xf0] sm:$0xff] %v734_v0  ;;  %v735_v35 = vadd.f32 %v990_v24, %v703_v38 }
 0x404   : > { %767 = vst [vmem:[%s1546_s29 + $0xf8] sm:$0xff] %v735_v35 }
 0x405   : > { %1032 = shalt.err (!%p1029_p10)
}
 0x406   : > { %s1033_s18 = scalar_lea.hbm %s1643_s8, 4096  ;;  %s1037_s25 = scalar_lea.hbm %s1693_s2, 8192 }
 0x407   : > { %p1034_p0 = scmp.ne.s32.totalorder %s1643_s8, %s1033_s18  ;;  %p1038_p1 = scmp.lt.s32.totalorder %s1643_s8, %s1693_s2 }
 0x408   : > { %p1039_p3 = scmp.lt.s32.totalorder %s1037_s25, %s1033_s18 }
 0x409   : > { %p1035_p2 = pnand %p1034_p0, %p1702_p12 }
 0x40a   : > { %p1040_p6 = por %p1039_p3, %p1038_p1 }
 0x40b   : > { %p1036_p9 = pneg %p1035_p2 }
 0x40d   : > { %p1041_p11 = pnand %p1040_p6, %p1036_p9 }
 0x40f   : > { %1044 = shalt.err (!%p1041_p11)
}
 0x410   : > { %s1090_s30 = smov 256   ;;  %s1091_s6 = smov 16  }
 0x411   : > { %873 = dma.vmem_to_hbm [thread:$0]  (%p1702_p12), %s1645_s4, 4096, %s1643_s8, %s769_s0, %s1090_s30, %s1090_s30, %s1091_s6  }
 0x412 PF: > { %s797_s21 = sand.u32 1, %s1071_s11   ;;  %p1703_p13 = scmp.ne.s32.totalorder %s1699_s23, 0 }
 0x413   : > { %p1704_p4 = scmp.ge.s32.totalorder %s1083_s14, 2  ;;  %s798_s29 = scalar_lea.sflag [#allocation5], %s797_s21 }
 0x415   : > { %p880_p5 = pnand %p1704_p4, %p1703_p13 }
 0x417   : > { %p881_p7 = pneg %p880_p5 }
 0x419   : > { %1066 = dma.done.wait (%p881_p7), %s798_s29, 4096  }
 0x41a   : > { %1068 = vsyncadd (%p881_p7), %s798_s29, 4294963200  ;;  %p16_p8 = scmp.ge.s32.totalorder %s1135_s16, 4   ;;  %s1705_s11 = smov %s1075_s12 }
 0x41b   : > { %s1706_s12 = smov %s1079_s13  ;;  %s1707_s13 = smov %s1147_s19 }
 0x41c   : > { %s1708_s14 = smov %s1135_s16  ;;  %18 = sbr.rel (!%p16_p8) target bundleno = 7 (0x7), region = 73 }
 0x421   :  { %803 = vsyncpa [#allocation4], 1 }
 0x422   :  { %805 = vsyncpa [#allocation4 + $0x1], 1 }
 0x423   :  { %806 = vsyncpa [#allocation5], 1 }
 0x424   :  { %808 = vsyncpa [#allocation5 + $0x1], 1 }

</bundles_post_ra>
